<compile_context>
chip_gen: v5e
topology: v5e:2x2
jax: 0.10.0
libtpu: 0.0.40
codegen_flags: <defaults>
</compile_context>

<pallas_src>
import numpy as np
import jax
import jax.numpy as jnp
from jax.experimental import pallas as pl
from jax.experimental.pallas import tpu as pltpu


# ----------------------------------------------------------------------------
# Host-side static bin construction (pure-Python port of the torch exp_buckets)
# ----------------------------------------------------------------------------
def exp_buckets(size, bin_size=10, base=1.1):
    i = 0
    done = bin_size
    bins = []
    idxs = []
    for j in range(size):
        if j >= done and size - done > bin_size * base ** (i + 1):
            i += 1
            done += bin_size * base ** i
            bins.append(idxs)
            idxs = []
        idxs.append(size - 1 - j)
    bins.append(idxs)
    return bins


def bin_weights(bins, size):
    """Per-feature weight so a flat weighted sum == mean-over-bins of bin means.

    The 0.5 loss factor is folded in; the batch size is NOT (divided out
    later), so weights are reusable across batch sizes.
    """
    w = np.zeros((size,), dtype=np.float32)
    nb = len(bins)
    for b in bins:
        w[np.asarray(b, dtype=np.int64)] = 0.5 / (nb * len(b))
    return jnp.asarray(w)


# ----------------------------------------------------------------------------
# Pallas kernel
# ----------------------------------------------------------------------------
def _make_kernel(B, S, tb, ts, need_row_mask, need_col_mask):
    def kernel(o_ref, t_ref, lv_ref, w_ref, out_ref):
        i = pl.program_id(0)
        j = pl.program_id(1)

        # Output block is the accumulator (same block index across the j axis).
        @pl.when(j == 0)
        def _():
            out_ref[...] = jnp.zeros_like(out_ref)

        o = o_ref[...].astype(jnp.float32)
        t = t_ref[...].astype(jnp.float32)
        lv = lv_ref[...].astype(jnp.float32)

        d = o - t
        # The 0.5 factors are folded into the host-built weights.
        elem = jnp.exp(-lv) * (d * d) + lv            # (tb, ts)

        # Zero out-of-range rows/lanes explicitly: ragged edge blocks carry
        # garbage in VMEM and 0 * NaN would poison the sum. Masks are only
        # emitted when the shape is statically ragged.
        valid = None
        if need_row_mask:
            rows = i * tb + jax.lax.broadcasted_iota(jnp.int32, (tb, 1), 0)
            valid = rows < B
        if need_col_mask:
            cols = j * ts + jax.lax.broadcasted_iota(jnp.int32, (1, ts), 1)
            cmask = cols < S
            valid = cmask if valid is None else (valid & cmask)
        if valid is not None:
            elem = jnp.where(valid, elem, jnp.float32(0.0))

        # Row (sublane) reduce only per step; the weight multiply is tS muls,
        # not tB*tS. The single cross-tile reduce happens outside the kernel.
        row_sum = jnp.sum(elem, axis=0, keepdims=True)    # (1, ts)
        w = w_ref[pl.ds(j, 1), :]                         # (1, ts), resident weights
        out_ref[...] += (row_sum * w)[None]               # (1, 1, ts)

    return kernel


def _round_up(x, m):
    return ((x + m - 1) // m) * m


def variance_attenuation_bins_loss(output, target, log_variance, weights,
                                   *, block_b=256, block_s=2048):
    """Scalar f32 loss matching VarianceAttenuationBinsLoss.forward."""
    assert output.shape == target.shape == log_variance.shape
    B, S = output.shape

    # Sublane multiple required by the narrowest input dtype:
    # 8 for 4-byte, 16 for 2-byte, 32 for 1-byte dtypes.
    sub = max(max(1, 8 * (4 // x.dtype.itemsize))
              for x in (output, target, log_variance))

    # ---- B (row) tiling ------------------------------------------------
    if B <= block_b:
        if B >= 256:
            # Split into >= 2 B tiles so both v7x TensorCores get fed along the
            # "parallel" axis; negligible cost on single-TC chips.
            tb = _round_up(-(-B // 2), sub)
        else:
            tb = B          # block dim == full array dim: always legal, no mask
    else:
        tb = _round_up(min(block_b, B), sub)
    nb = -(-B // tb)
    need_row_mask = (B % tb) != 0

    # ---- S (lane) tiling -------------------------------------------------
    if S <= block_s:
        ts = S              # full dim: legal, no padding, no mask
    else:
        ts = _round_up(block_s, 128)
    ns = -(-S // ts)
    need_col_mask = (S % ts) != 0

    # ---- weights: tiny, pad to the tile grid, keep resident in VMEM -------
    w = jnp.asarray(weights, dtype=jnp.float32).reshape(-1)
    assert w.shape[0] == S
    if ns * ts != S:
        w = jnp.pad(w, (0, ns * ts - S))
    w = w.reshape(ns, ts)

    kernel = _make_kernel(B, S, tb, ts, need_row_mask, need_col_mask)

    in_itemsize = sum(x.dtype.itemsize for x in (output, target, log_variance))
    # Double-buffered input blocks + resident weights + output accumulator,
    # plus headroom for Mosaic internal scratch.
    vmem_needed = 2 * tb * ts * in_itemsize + 2 * ns * ts * 4 + 2 * ts * 4
    vmem_limit = int(min(100 * (1 << 20), vmem_needed + (8 << 20)))

    cost = pl.CostEstimate(
        flops=6 * B * S,
        transcendentals=B * S,
        bytes_accessed=B * S * in_itemsize + ns * ts * 4 + nb * ts * 4,
    )

    partial = pl.pallas_call(
        kernel,
        out_shape=jax.ShapeDtypeStruct((nb, 1, ts), jnp.float32),
        grid_spec=pltpu.PrefetchScalarGridSpec(
            num_scalar_prefetch=0,
            grid=(nb, ns),
            in_specs=[
                pl.BlockSpec((tb, ts), lambda i, j: (i, j)),
                pl.BlockSpec((tb, ts), lambda i, j: (i, j)),
                pl.BlockSpec((tb, ts), lambda i, j: (i, j)),
                pl.BlockSpec((ns, ts), lambda i, j: (0, 0)),   # resident weights
            ],
            out_specs=pl.BlockSpec((1, 1, ts), lambda i, j: (i, 0, 0)),
        ),
        compiler_params=pltpu.CompilerParams(
            dimension_semantics=("parallel", "arbitrary"),
            vmem_limit_bytes=vmem_limit),
        cost_estimate=cost,
    )(output, target, log_variance, w)

    # Tiny cross-tile reduction and the runtime 1/B happen in plain XLA.
    return jnp.sum(partial) / jnp.float32(B)


# ----------------------------------------------------------------------------
# Plain-JAX reference mirroring the torch forward, for verification.
# ----------------------------------------------------------------------------
def _ref_loss(output, target, log_variance, bins):
    vals = []
    for b in bins:
        idx = jnp.asarray(np.asarray(b, dtype=np.int32))
        o, t, lv = output[:, idx], target[:, idx], log_variance[:, idx]
        loss = 0.5 * jnp.exp(-lv) * (o - t) ** 2 + 0.5 * lv
        vals.append(loss.mean())
    return jnp.stack(vals).mean()


def _run_case(key, B, S, *, block_b=256, block_s=2048, dtype=jnp.float32):
    bins = exp_buckets(S, bin_size=10, base=1.1)
    weights = bin_weights(bins, S)
    k1, k2, k3 = jax.random.split(key, 3)
    output = jax.random.normal(k1, (B, S), dtype=jnp.float32).astype(dtype)
    target = jax.random.normal(k2, (B, S), dtype=jnp.float32).astype(dtype)
    log_variance = (0.5 * jax.random.normal(k3, (B, S),
                                            dtype=jnp.float32)).astype(dtype)

    loss = variance_attenuation_bins_loss(
        output, target, log_variance, weights,
        block_b=block_b, block_s=block_s)
    loss = jax.block_until_ready(loss)

    ref = jax.block_until_ready(
        _ref_loss(output.astype(jnp.float32), target.astype(jnp.float32),
                  log_variance.astype(jnp.float32), bins))
    assert np.allclose(float(loss), float(ref), rtol=1e-5, atol=1e-5), \
        (B, S, float(loss), float(ref))


if __name__ == "__main__":
    key = jax.random.PRNGKey(0)
    k_small, k_ragged = jax.random.split(key)

    # Nominal module-sized problem (single grid step, no masking, no padding).
    _run_case(k_small, B=2, S=64)

    # Ragged multi-tile case with forced small tiles: partial last row tile
    # (B=20, tb=8) and partial last column tile (S=300, ts=128), exercising
    # the in-kernel iota masks, the resident-weights slicing and the
    # output-block accumulator across a (3, 3) grid.
    _run_case(k_ragged, B=20, S=300, block_b=8, block_s=128)

    print("KERNEL_OK")
</pallas_src>

<mosaic_0001>
module attributes {stable_mosaic.version = 11 : i64} {
  func.func @kernel(%arg0: i32, %arg1: i32, %arg2: memref<2x64xf32, #tpu.memory_space<vmem>>, %arg3: memref<2x64xf32, #tpu.memory_space<vmem>>, %arg4: memref<2x64xf32, #tpu.memory_space<vmem>>, %arg5: memref<1x64xf32, #tpu.memory_space<vmem>>, %arg6: memref<1x1x64xf32, #tpu.memory_space<vmem>>) attributes {dimension_semantics = [#tpu.dimension_semantics<parallel>, #tpu.dimension_semantics<arbitrary>], iteration_bounds = array<i64: 1, 1>, scalar_prefetch = 0 : i64, scratch_operands = 0 : i64, tpu.core_type = #tpu.core_type<tc>, window_params = [{transform_indices = @transform_0, window_bounds = array<i64: 2, 64>}, {transform_indices = @transform_1, window_bounds = array<i64: 2, 64>}, {transform_indices = @transform_2, window_bounds = array<i64: 2, 64>}, {pipeline_mode = #tpu.pipeline_mode<synchronous>, transform_indices = @transform_3, window_bounds = array<i64: 1, 64>}, {transform_indices = @transform_4, window_bounds = array<i64: 1, 1, 64>}]} {
    %c0_i32 = arith.constant 0 : i32
    %0 = arith.cmpi eq, %arg1, %c0_i32 : i32
    %1 = arith.extui %0 : i1 to i32
    %c0_i32_0 = arith.constant 0 : i32
    %2 = arith.cmpi ne, %1, %c0_i32_0 : i32
    scf.if %2 {
      %cst_14 = arith.constant 0.000000e+00 : f32
      %22 = vector.broadcast %cst_14 : f32 to vector<1x1x64xf32>
      %c0_15 = arith.constant 0 : index
      %c0_16 = arith.constant 0 : index
      %c0_17 = arith.constant 0 : index
      %23 = vector.load %arg6[%c0_15, %c0_16, %c0_17] : memref<1x1x64xf32, #tpu.memory_space<vmem>>, vector<1x1x64xf32>
      tpu.vector_store %arg6[%c0_15, %c0_16, %c0_17], %22 {strides = array<i32>} : memref<1x1x64xf32, #tpu.memory_space<vmem>>, vector<1x1x64xf32>,
    } else {
    }
    %c0 = arith.constant 0 : index
    %c0_1 = arith.constant 0 : index
    %3 = vector.load %arg2[%c0, %c0_1] : memref<2x64xf32, #tpu.memory_space<vmem>>, vector<2x64xf32>
    %c0_2 = arith.constant 0 : index
    %c0_3 = arith.constant 0 : index
    %4 = vector.load %arg3[%c0_2, %c0_3] : memref<2x64xf32, #tpu.memory_space<vmem>>, vector<2x64xf32>
    %c0_4 = arith.constant 0 : index
    %c0_5 = arith.constant 0 : index
    %5 = vector.load %arg4[%c0_4, %c0_5] : memref<2x64xf32, #tpu.memory_space<vmem>>, vector<2x64xf32>
    %6 = arith.subf %3, %4 : vector<2x64xf32>
    %cst = arith.constant 0.000000e+00 : f32
    %7 = vector.broadcast %cst : f32 to vector<2x64xf32>
    %8 = arith.subf %7, %5 : vector<2x64xf32>
    %9 = math.exp %8 : vector<2x64xf32>
    %10 = arith.mulf %6, %6 : vector<2x64xf32>
    %11 = arith.mulf %9, %10 : vector<2x64xf32>
    %12 = arith.addf %11, %5 : vector<2x64xf32>
    %cst_6 = arith.constant dense<0.000000e+00> : vector<64xf32>
    %13 = vector.multi_reduction <add>, %12, %cst_6 [0] : vector<2x64xf32> to vector<64xf32>
    %14 = vector.shape_cast %13 : vector<64xf32> to vector<1x64xf32>
    %15 = arith.index_cast %arg1 : i32 to index
    %c0_7 = arith.constant 0 : index
    %16 = vector.load %arg5[%15, %c0_7] : memref<1x64xf32, #tpu.memory_space<vmem>>, vector<1x64xf32>
    %c0_8 = arith.constant 0 : index
    %c0_9 = arith.constant 0 : index
    %c0_10 = arith.constant 0 : index
    %17 = vector.load %arg6[%c0_8, %c0_9, %c0_10] : memref<1x1x64xf32, #tpu.memory_space<vmem>>, vector<1x1x64xf32>
    %18 = arith.mulf %14, %16 : vector<1x64xf32>
    %19 = vector.shape_cast %18 : vector<1x64xf32> to vector<1x1x64xf32>
    %20 = arith.addf %17, %19 : vector<1x1x64xf32>
    %c0_11 = arith.constant 0 : index
    %c0_12 = arith.constant 0 : index
    %c0_13 = arith.constant 0 : index
    %21 = vector.load %arg6[%c0_11, %c0_12, %c0_13] : memref<1x1x64xf32, #tpu.memory_space<vmem>>, vector<1x1x64xf32>
    tpu.vector_store %arg6[%c0_11, %c0_12, %c0_13], %20 {strides = array<i32>} : memref<1x1x64xf32, #tpu.memory_space<vmem>>, vector<1x1x64xf32>,
    return
  }
  func.func @transform_0(%arg0: i32, %arg1: i32) -> (i32, i32) {
    %c0_i32 = arith.constant 0 : i32
    return %arg0, %arg1 : i32, i32
  }
  func.func @transform_1(%arg0: i32, %arg1: i32) -> (i32, i32) {
    %c0_i32 = arith.constant 0 : i32
    return %arg0, %arg1 : i32, i32
  }
  func.func @transform_2(%arg0: i32, %arg1: i32) -> (i32, i32) {
    %c0_i32 = arith.constant 0 : i32
    return %arg0, %arg1 : i32, i32
  }
  func.func @transform_3(%arg0: i32, %arg1: i32) -> (i32, i32) {
    %c0_i32 = arith.constant 0 : i32
    %c0_i32_0 = arith.constant 0 : i32
    %c0_i32_1 = arith.constant 0 : i32
    return %c0_i32, %c0_i32_0 : i32, i32
  }
  func.func @transform_4(%arg0: i32, %arg1: i32) -> (i32, i32, i32) {
    %c0_i32 = arith.constant 0 : i32
    %c0_i32_0 = arith.constant 0 : i32
    %c0_i32_1 = arith.constant 0 : i32
    return %arg0, %c0_i32, %c0_i32_0 : i32, i32, i32
  }
}

</mosaic_0001>

<bundles_post_ra>
// kernel: tpu_custom_call.1
= control target key start
LH: loop header
LB: loop body
LE: loop exit
PB: predicated region body
PF: predicated region fallthrough
CT: control target
= control target key end

     0   :  { %9 = vsyncpa [#allocation3], 0  ;;  %s263_s0 = inlined_call_operand.hbm [shape: f32[2,64], index: 0, kind: input, shape index: {}]   ;;  %s264_s1 = inlined_call_operand.hbm [shape: f32[2,64], index: 1, kind: input, shape index: {}]   ;;  %s265_s2 = inlined_call_operand.hbm [shape: f32[2,64], index: 2, kind: input, shape index: {}]   ;;  %s266_s3 = inlined_call_operand.vmem [shape: f32[1,64], index: 3, kind: input, shape index: {}]   ;;  %s267_s4 = inlined_call_operand.hbm [shape: f32[1,1,64], index: 4, kind: output, shape index: {}]  }
   0x1   :  { %10 = vsyncpa [#allocation6], 0  ;;  %s28_s17 = sshll.u32 %s264_s1, 4  ;;  %s29_s17 = int_to_ptr.hbm [resolvable:$true] %s28_s17 }
   0x2   :  { %11 = vsyncpa [#allocation4], 0  ;;  %s216_s18 = smov [#allocation5]   ;;  %s17_s22 = sshll.u32 %s263_s0, 4  ;;  %s18_s22 = int_to_ptr.hbm [resolvable:$true] %s17_s22 }
   0x3   :  { %s30_s19 = sshll.u32 %s216_s18, 4  ;;  %s217_s23 = smov [#allocation2]   ;;  %s31_s19 = int_to_ptr.vmem [resolvable:$true] %s30_s19 }
   0x4   :  { %33 = dma.hbm_to_vmem [thread:$0]  %s29_s17, 32, %s31_s19, [#allocation6]  }
   0x5   :  { %s19_s24 = sshll.u32 %s217_s23, 4  ;;  %s39_s27 = sshll.u32 %s265_s2, 4  ;;  %s20_s24 = int_to_ptr.vmem [resolvable:$true] %s19_s24  ;;  %s40_s27 = int_to_ptr.hbm [resolvable:$true] %s39_s27 }
   0x6   :  { %22 = dma.hbm_to_vmem [thread:$0]  %s18_s22, 32, %s20_s24, [#allocation3]  }
   0x7   :  { %s218_s1 = smov [#allocation7]  }
   0x8   :  { %s41_s28 = sshll.u32 %s218_s1, 4  ;;  %s42_s28 = int_to_ptr.vmem [resolvable:$true] %s41_s28 }
   0x9   :  { %44 = dma.hbm_to_vmem [thread:$0]  %s40_s27, 32, %s42_s28, [#allocation6]  }
   0xa   :  { %210 = dma.done.wait [#allocation3], 32  }
   0xb   :  { %211 = vsyncadd [#allocation3], 4294967264 }
   0xc   :  { %212 = dma.done.wait [#allocation6], 64  }
   0xd   :  { %213 = vsyncadd [#allocation6], 4294967232  ;;  %vm63_vm0 = vcmask 516096   ;;  %v219_v0 = vmov 0.0   ;;  %v67_v1 = vld [vmem:[#allocation7] sm:$0x3] }
   0xe   :  { %64 = vst.msk [vmem:[#allocation8] sm:$0x1] %vm63_vm0, %v219_v0  ;;  %v65_v2 = vld [vmem:[#allocation2] sm:$0x3]  ;;  %v66_v3 = vld [vmem:[#allocation5] sm:$0x3] }
   0xf   :  { %v69_v4 = vsub.f32 0.0, %v67_v1  ;;  %v68_v6 = vsub.f32 %v65_v2, %v66_v3  ;;  %vm75_vm1 = vcmask 517120   ;;  %v83_v17 = vld [vmem:[%s266_s3] sm:$0x1]  ;;  %s220_s29 = smov [#allocation8]   ;;  %s96_s7 = sshll.u32 %s267_s4, 4  ;;  %s97_s7 = int_to_ptr.hbm [resolvable:$true] %s96_s7 }
  0x10   :  { %s94_s30 = sshll.u32 %s220_s29, 4  ;;  %s95_s30 = int_to_ptr.vmem [resolvable:$true] %s94_s30 }
  0x11   :  { %v70_v5 = vmul.f32 1.442695, %v69_v4  ;;  %v72_v7 = vmul.f32 %v68_v6, %v68_v6 }
  0x13   :  { %112 = vpow2.f32 %v70_v5 }
  0x15   :  { %v84_v19 = vld [vmem:[#allocation8] sm:$0x1] }
  0x19   :  { %v113_v8 = vpop.eup %112 }
  0x1a   :  { %v73_v9 = vmul.f32 %v113_v8, %v72_v7 }
  0x1c   :  { %v74_v10 = vadd.f32 %v73_v9, %v67_v1 }
  0x1e   :  { %v76_v11 = vsel %vm75_vm1, %v74_v10, 0.0 }
  0x1f   :  { %v77_v12 = vrot.slane %v76_v11, 4 }
  0x21   :  { %v78_v13 = vadd.f32 %v77_v12, %v76_v11 }
  0x23   :  { %v79_v14 = vrot.slane %v78_v13, 2 }
  0x25   :  { %v80_v15 = vadd.f32 %v79_v14, %v78_v13 }
  0x27   :  { %v81_v16 = vrot.slane %v80_v15, 1 }
  0x29   :  { %v82_v18 = vadd.f32 %v81_v16, %v80_v15 }
  0x2b   :  { %v85_v20 = vmul.f32 %v83_v17, %v82_v18 }
  0x2d   :  { %v86_v21 = vadd.f32 %v85_v20, %v84_v19 }
  0x2f   :  { %88 = vst.msk [vmem:[#allocation8] sm:$0x1] %vm63_vm0, %v86_v21 }
  0x30   :  { %99 = dma.vmem_to_hbm [thread:$0]  %s95_s30, 16, %s97_s7, [#allocation4]  }
  0x31   :  { %214 = dma.done.wait [#allocation4], 16  }
  0x32   :  { %215 = vsyncadd [#allocation4], 4294967280 }
  0x33   :  { %104 = vsyncpa [#allocation3], 1 }
  0x34   :  { %105 = vsyncpa [#allocation6], 1 }
  0x35   :  { %106 = vsyncpa [#allocation4], 1 }

</bundles_post_ra>
